<compile_context>
chip_gen: v6e
topology: v6e:2x2x1
jax: 0.10.0
libtpu: 0.0.40
codegen_flags: <defaults>
</compile_context>

<pallas_src>
import functools
import math

import jax
import jax.numpy as jnp
from jax.experimental import pallas as pl
from jax.experimental.pallas import tpu as pltpu


def _normalize(v, alpha, gamma, eps):
    """torch-style Normalizator: alpha*(v-mean)/(std+eps)+gamma, unbiased std."""
    d = v.shape[-1]
    mean = jnp.mean(v, axis=-1, keepdims=True)
    c = v - mean
    var = jnp.sum(c * c, axis=-1, keepdims=True) / jnp.float32(d - 1)
    return alpha * c / (jnp.sqrt(var) + jnp.float32(eps)) + gamma


def _mm(a, b):
    # Default MXU precision (single-pass), f32 accumulation.
    return jnp.dot(a, b, preferred_element_type=jnp.float32)


# --------------------------------------------------------------------------
# Pass 1: Norm(x) and Q/K/V projections, computed once over row tiles.
# --------------------------------------------------------------------------
def _qkv_kernel(ng_ref, x_ref, wq_ref, bq_ref, wk_ref, bk_ref, wv_ref, bv_ref,
                q_ref, k_ref, v_ref, *, eps: float, inv_sqrt_dk: float):
    alpha1, gamma1 = ng_ref[0], ng_ref[1]
    xn = _normalize(x_ref[...], alpha1, gamma1, eps)
    # Pre-scale Q once so attention needs no per-head (TS, S) scaling.
    q_ref[...] = (_mm(xn, wq_ref[...]) + bq_ref[...]) * jnp.float32(inv_sqrt_dk)
    k_ref[...] = _mm(xn, wk_ref[...]) + bk_ref[...]
    v_ref[...] = _mm(xn, wv_ref[...]) + bv_ref[...]


# --------------------------------------------------------------------------
# Pass 2: masked multi-head attention + Wo + Norm + FFN + both residuals,
# tiled over query rows; K/V are the full sequence (resident in VMEM).
# --------------------------------------------------------------------------
def _attn_ffn_kernel(ng_ref, x_ref, q_ref, k_ref, v_ref, mask_ref,
                     wo_ref, bo_ref, w1_ref, b1_ref, w2_ref, b2_ref,
                     o_ref, attn_scratch, *, num_heads: int, eps: float):
    f32 = jnp.float32
    alpha2, gamma2 = ng_ref[0], ng_ref[1]

    x_t = x_ref[...]                                   # (TS, D) residual rows
    q = q_ref[...]                                     # (TS, D) pre-scaled
    k = k_ref[...]                                     # (S, D)
    v = v_ref[...]                                     # (S, D)
    mask_zero = mask_ref[...].astype(jnp.int32) == 0   # (TS, S) from int8

    d_model = q.shape[-1]
    d_k = d_model // num_heads

    # Static Python loop over heads (num_heads is small).  Each head writes
    # its (TS, d_k) output into a lane slice of the (TS, D) scratch so the
    # output projection is a single full-D MXU matmul.
    for h in range(num_heads):
        lo = h * d_k
        qh = q[:, lo:lo + d_k]                         # (TS, dk)
        kh = k[:, lo:lo + d_k]                         # (S, dk)
        vh = v[:, lo:lo + d_k]                         # (S, dk)
        scores = _mm(qh, kh.T)                         # (TS, S)
        scores = jnp.where(mask_zero, f32(-1e9), scores)
        scores = scores - jnp.max(scores, axis=-1, keepdims=True)
        p = jnp.exp(scores)
        inv = pl.reciprocal(jnp.sum(p, axis=-1, keepdims=True), approx=True)
        attn_scratch[:, lo:lo + d_k] = _mm(p, vh) * inv  # fold 1/sum into (TS,dk)

    attn = _mm(attn_scratch[...], wo_ref[...]) + bo_ref[...]

    # Residual connection 0 (dropout = identity).
    x1 = x_t + attn

    # FeedForward on Norm(x1); residual connection 1.
    xn2 = _normalize(x1, alpha2, gamma2, eps)
    h1 = jnp.maximum(_mm(xn2, w1_ref[...]) + b1_ref[...], f32(0.0))
    ff = _mm(h1, w2_ref[...]) + b2_ref[...]

    o_ref[...] = x1 + ff


def _vmem_limit(operands):
    n = sum(int(a.size) * a.dtype.itemsize for a in operands)
    # Double-buffered operands + headroom, clamped to a sane scoped limit.
    return int(min(100 * 1024 * 1024, max(32 * 1024 * 1024, 2 * n + (4 << 20))))


def encoder_block(x, src_mask, params, *, num_heads, eps=1e-6, tile_s=None):
    """Pallas equivalent of EncoderBlock.forward(input, src_mask)."""
    S, D = x.shape
    d_ff = params["w1"].shape[0]
    assert D % num_heads == 0, "d_model is not divisible by num_heads"
    d_k = D // num_heads

    if tile_s is None:
        if S <= 256:
            tile_s = S
        elif S % 256 == 0:
            tile_s = 256
        elif S % 128 == 0:
            tile_s = 128
        else:
            tile_s = S
    assert S % tile_s == 0 and (tile_s == S or tile_s % 8 == 0)

    # nn.Linear weights are (out, in); transpose once wrapper-side so the
    # kernels run plain x @ W.  Biases become lane-dense (1, out) rows.
    wq_t, wk_t = params["wq"].T, params["wk"].T
    wv_t, wo_t = params["wv"].T, params["wo"].T
    w1_t, w2_t = params["w1"].T, params["w2"].T
    bq = params["bq"].reshape(1, D)
    bk = params["bk"].reshape(1, D)
    bv = params["bv"].reshape(1, D)
    bo = params["bo"].reshape(1, D)
    b1 = params["b1"].reshape(1, d_ff)
    b2 = params["b2"].reshape(1, D)

    # Norm scalars (alpha/gamma of both Normalizators) go on the scalar path.
    norm1 = jnp.stack([params["alpha1"], params["gamma1"]]).astype(jnp.float32)
    norm2 = jnp.stack([params["alpha2"], params["gamma2"]]).astype(jnp.float32)

    x = x.astype(jnp.float32)
    mask_i8 = src_mask.astype(jnp.int8)       # 4x less HBM / VMEM than int32

    def full(shape):
        return pl.BlockSpec(shape, lambda i: (0, 0))

    def row_tile(cols):
        return pl.BlockSpec((tile_s, cols), lambda i: (i, 0))

    smem_spec = pl.BlockSpec(memory_space=pltpu.MemorySpace.SMEM)

    # ---- Pass 1: Q/K/V (computed once; no per-query-tile recompute). -------
    qkv_kernel = functools.partial(_qkv_kernel, eps=eps,
                                   inv_sqrt_dk=1.0 / math.sqrt(d_k))
    qkv_ops = (x, wq_t, bq, wk_t, bk, wv_t, bv)
    q, k, v = pl.pallas_call(
        qkv_kernel,
        out_shape=(jax.ShapeDtypeStruct((S, D), jnp.float32),) * 3,
        grid_spec=pltpu.PrefetchScalarGridSpec(
            num_scalar_prefetch=0,
            grid=(S // tile_s,),
            in_specs=[smem_spec,                       # norm-1 scalars
                      row_tile(D),                     # x row tile
                      full((D, D)), full((1, D)),      # Wq, bq
                      full((D, D)), full((1, D)),      # Wk, bk
                      full((D, D)), full((1, D))],     # Wv, bv
            out_specs=[row_tile(D), row_tile(D), row_tile(D)],
        ),
        compiler_params=pltpu.CompilerParams(
            dimension_semantics=("parallel",),
            vmem_limit_bytes=_vmem_limit(qkv_ops)),
    )(norm1, x, wq_t, bq, wk_t, bk, wv_t, bv)

    # ---- Pass 2: attention + Wo + FFN + residuals over query-row tiles. ----
    attn_kernel = functools.partial(_attn_ffn_kernel,
                                    num_heads=num_heads, eps=eps)
    attn_ops = (x, q, k, v, mask_i8, wo_t, bo, w1_t, b1, w2_t, b2)
    out = pl.pallas_call(
        attn_kernel,
        out_shape=jax.ShapeDtypeStruct((S, D), jnp.float32),
        grid_spec=pltpu.PrefetchScalarGridSpec(
            num_scalar_prefetch=0,
            grid=(S // tile_s,),
            in_specs=[smem_spec,                       # norm-2 scalars
                      row_tile(D),                     # x row tile (residual)
                      row_tile(D),                     # q row tile (pre-scaled)
                      full((S, D)),                    # K full sequence
                      full((S, D)),                    # V full sequence
                      row_tile(S),                     # mask rows (int8)
                      full((D, D)), full((1, D)),      # Wo, bo
                      full((D, d_ff)), full((1, d_ff)),  # W1, b1
                      full((d_ff, D)), full((1, D))],  # W2, b2
            out_specs=row_tile(D),
            scratch_shapes=[pltpu.VMEM((tile_s, D), jnp.float32)],
        ),
        compiler_params=pltpu.CompilerParams(
            dimension_semantics=("parallel",),
            vmem_limit_bytes=_vmem_limit(attn_ops)),
    )(norm2, x, q, k, v, mask_i8, wo_t, bo, w1_t, b1, w2_t, b2)
    return out


def encoder_block_ref(x, src_mask, params, *, num_heads, eps=1e-6):
    """Pure-JAX reference mirroring the PyTorch module exactly."""
    def norm(v, alpha, gamma):
        mean = v.mean(-1, keepdims=True)
        c = v - mean
        std = jnp.sqrt((c * c).sum(-1, keepdims=True) / (v.shape[-1] - 1))
        return alpha * c / (std + eps) + gamma

    def linear(v, w, b):
        return jnp.dot(v, w.T) + b

    S, D = x.shape
    d_k = D // num_heads

    xn = norm(x, params["alpha1"], params["gamma1"])
    q = linear(xn, params["wq"], params["bq"]).reshape(S, num_heads, d_k).transpose(1, 0, 2)
    k = linear(xn, params["wk"], params["bk"]).reshape(S, num_heads, d_k).transpose(1, 0, 2)
    v = linear(xn, params["wv"], params["bv"]).reshape(S, num_heads, d_k).transpose(1, 0, 2)

    scores = jnp.einsum("hqd,hkd->hqk", q, k) / math.sqrt(d_k)
    scores = jnp.where(src_mask[None, :, :] == 0, -1e9, scores)
    p = jax.nn.softmax(scores, axis=-1)
    attn = jnp.einsum("hqk,hkd->hqd", p, v)
    attn = attn.transpose(1, 0, 2).reshape(S, D)
    attn = linear(attn, params["wo"], params["bo"])

    x1 = x + attn
    xn2 = norm(x1, params["alpha2"], params["gamma2"])
    ff = linear(jnp.maximum(linear(xn2, params["w1"], params["b1"]), 0.0),
                params["w2"], params["b2"])
    return x1 + ff


if __name__ == "__main__":
    d_model, num_heads, d_ff, seq = 32, 4, 64, 8

    key = jax.random.PRNGKey(0)
    ks = jax.random.split(key, 13)
    s = 0.1
    params = {
        "wq": s * jax.random.normal(ks[0], (d_model, d_model), jnp.float32),
        "bq": s * jax.random.normal(ks[1], (d_model,), jnp.float32),
        "wk": s * jax.random.normal(ks[2], (d_model, d_model), jnp.float32),
        "bk": s * jax.random.normal(ks[3], (d_model,), jnp.float32),
        "wv": s * jax.random.normal(ks[4], (d_model, d_model), jnp.float32),
        "bv": s * jax.random.normal(ks[5], (d_model,), jnp.float32),
        "wo": s * jax.random.normal(ks[6], (d_model, d_model), jnp.float32),
        "bo": s * jax.random.normal(ks[7], (d_model,), jnp.float32),
        "w1": s * jax.random.normal(ks[8], (d_ff, d_model), jnp.float32),
        "b1": s * jax.random.normal(ks[9], (d_ff,), jnp.float32),
        "w2": s * jax.random.normal(ks[10], (d_model, d_ff), jnp.float32),
        "b2": s * jax.random.normal(ks[11], (d_model,), jnp.float32),
        # Normalizator params (module default init: alpha=1, gamma=0).
        "alpha1": jnp.float32(1.0), "gamma1": jnp.float32(0.0),
        "alpha2": jnp.float32(1.0), "gamma2": jnp.float32(0.0),
    }

    x = jax.random.normal(ks[12], (seq, d_model), jnp.float32)
    src_mask = jnp.tril(jnp.ones((seq, seq), jnp.int32))   # mask with real zeros

    out = encoder_block(x, src_mask, params, num_heads=num_heads)
    out = jax.block_until_ready(out)

    ref = encoder_block_ref(x, src_mask, params, num_heads=num_heads)
    assert out.shape == (seq, d_model)
    max_err = float(jnp.max(jnp.abs(out - ref)))
    # Default (single-pass) MXU precision + approx reciprocal => looser tol.
    assert jnp.allclose(out, ref, atol=2e-2, rtol=2e-2), f"max_err={max_err}"

    print("KERNEL_OK")
</pallas_src>

<mosaic_0001>
module attributes {stable_mosaic.version = 11 : i64} {
  func.func @_qkv_kernel(%arg0: i32, %arg1: memref<2xf32, #tpu.memory_space<smem>>, %arg2: memref<8x32xf32, #tpu.memory_space<vmem>>, %arg3: memref<32x32xf32, #tpu.memory_space<vmem>>, %arg4: memref<1x32xf32, #tpu.memory_space<vmem>>, %arg5: memref<32x32xf32, #tpu.memory_space<vmem>>, %arg6: memref<1x32xf32, #tpu.memory_space<vmem>>, %arg7: memref<32x32xf32, #tpu.memory_space<vmem>>, %arg8: memref<1x32xf32, #tpu.memory_space<vmem>>, %arg9: memref<8x32xf32, #tpu.memory_space<vmem>>, %arg10: memref<8x32xf32, #tpu.memory_space<vmem>>, %arg11: memref<8x32xf32, #tpu.memory_space<vmem>>) attributes {dimension_semantics = [#tpu.dimension_semantics<parallel>], iteration_bounds = array<i64: 1>, scalar_prefetch = 0 : i64, scratch_operands = 0 : i64, tpu.core_type = #tpu.core_type<tc>, window_params = [{transform_indices = @transform_0, window_bounds = array<i64: 2>}, {transform_indices = @transform_1, window_bounds = array<i64: 8, 32>}, {pipeline_mode = #tpu.pipeline_mode<synchronous>, transform_indices = @transform_2, window_bounds = array<i64: 32, 32>}, {pipeline_mode = #tpu.pipeline_mode<synchronous>, transform_indices = @transform_3, window_bounds = array<i64: 1, 32>}, {pipeline_mode = #tpu.pipeline_mode<synchronous>, transform_indices = @transform_4, window_bounds = array<i64: 32, 32>}, {pipeline_mode = #tpu.pipeline_mode<synchronous>, transform_indices = @transform_5, window_bounds = array<i64: 1, 32>}, {pipeline_mode = #tpu.pipeline_mode<synchronous>, transform_indices = @transform_6, window_bounds = array<i64: 32, 32>}, {pipeline_mode = #tpu.pipeline_mode<synchronous>, transform_indices = @transform_7, window_bounds = array<i64: 1, 32>}, {transform_indices = @transform_8, window_bounds = array<i64: 8, 32>}, {transform_indices = @transform_9, window_bounds = array<i64: 8, 32>}, {transform_indices = @transform_10, window_bounds = array<i64: 8, 32>}]} {
    %c0 = arith.constant 0 : index
    %0 = memref.load %arg1[%c0] : memref<2xf32, #tpu.memory_space<smem>>
    %c1 = arith.constant 1 : index
    %1 = memref.load %arg1[%c1] : memref<2xf32, #tpu.memory_space<smem>>
    %c0_0 = arith.constant 0 : index
    %c0_1 = arith.constant 0 : index
    %2 = vector.load %arg2[%c0_0, %c0_1] : memref<8x32xf32, #tpu.memory_space<vmem>>, vector<8x32xf32>
    %cst = arith.constant dense<0.000000e+00> : vector<8xf32>
    %3 = vector.multi_reduction <add>, %2, %cst [1] : vector<8x32xf32> to vector<8xf32>
    %4 = vector.shape_cast %3 : vector<8xf32> to vector<8x1xf32>
    %cst_2 = arith.constant 3.200000e+01 : f32
    %5 = vector.broadcast %cst_2 : f32 to vector<8x1xf32>
    %6 = arith.divf %4, %5 : vector<8x1xf32>
    %7 = vector.broadcast %6 : vector<8x1xf32> to vector<8x32xf32>
    %8 = arith.subf %2, %7 : vector<8x32xf32>
    %9 = arith.mulf %8, %8 : vector<8x32xf32>
    %cst_3 = arith.constant dense<0.000000e+00> : vector<8xf32>
    %10 = vector.multi_reduction <add>, %9, %cst_3 [1] : vector<8x32xf32> to vector<8xf32>
    %11 = vector.shape_cast %10 : vector<8xf32> to vector<8x1xf32>
    %cst_4 = arith.constant 3.100000e+01 : f32
    %12 = vector.broadcast %cst_4 : f32 to vector<8x1xf32>
    %13 = arith.divf %11, %12 : vector<8x1xf32>
    %14 = vector.broadcast %0 : f32 to vector<8x32xf32>
    %15 = arith.mulf %14, %8 : vector<8x32xf32>
    %16 = math.sqrt %13 : vector<8x1xf32>
    %cst_5 = arith.constant 9.99999997E-7 : f32
    %17 = vector.broadcast %cst_5 : f32 to vector<8x1xf32>
    %18 = arith.addf %16, %17 : vector<8x1xf32>
    %19 = vector.broadcast %18 : vector<8x1xf32> to vector<8x32xf32>
    %20 = arith.divf %15, %19 : vector<8x32xf32>
    %21 = vector.broadcast %1 : f32 to vector<8x32xf32>
    %22 = arith.addf %20, %21 : vector<8x32xf32>
    %c0_6 = arith.constant 0 : index
    %c0_7 = arith.constant 0 : index
    %23 = vector.load %arg3[%c0_6, %c0_7] : memref<32x32xf32, #tpu.memory_space<vmem>>, vector<32x32xf32>
    %cst_8 = arith.constant dense<0.000000e+00> : vector<8x32xf32>
    %24 = tpu.matmul %22, %23, %cst_8 {dimension_numbers = #tpu.dot_dimension_numbers<[1], [0], [0], [1], [0, 0, 1, 1], [], []>} : vector<8x32xf32>, vector<32x32xf32>, vector<8x32xf32> -> vector<8x32xf32>
    %c0_9 = arith.constant 0 : index
    %c0_10 = arith.constant 0 : index
    %25 = vector.load %arg4[%c0_9, %c0_10] : memref<1x32xf32, #tpu.memory_space<vmem>>, vector<1x32xf32>
    %26 = vector.broadcast %25 : vector<1x32xf32> to vector<8x32xf32>
    %27 = arith.addf %24, %26 : vector<8x32xf32>
    %cst_11 = arith.constant 0.353553385 : f32
    %28 = vector.broadcast %cst_11 : f32 to vector<8x32xf32>
    %29 = arith.mulf %27, %28 : vector<8x32xf32>
    %c0_12 = arith.constant 0 : index
    %c0_13 = arith.constant 0 : index
    %30 = vector.load %arg9[%c0_12, %c0_13] : memref<8x32xf32, #tpu.memory_space<vmem>>, vector<8x32xf32>
    tpu.vector_store %arg9[%c0_12, %c0_13], %29 {strides = array<i32>} : memref<8x32xf32, #tpu.memory_space<vmem>>, vector<8x32xf32>,
    %c0_14 = arith.constant 0 : index
    %c0_15 = arith.constant 0 : index
    %31 = vector.load %arg5[%c0_14, %c0_15] : memref<32x32xf32, #tpu.memory_space<vmem>>, vector<32x32xf32>
    %cst_16 = arith.constant dense<0.000000e+00> : vector<8x32xf32>
    %32 = tpu.matmul %22, %31, %cst_16 {dimension_numbers = #tpu.dot_dimension_numbers<[1], [0], [0], [1], [0, 0, 1, 1], [], []>} : vector<8x32xf32>, vector<32x32xf32>, vector<8x32xf32> -> vector<8x32xf32>
    %c0_17 = arith.constant 0 : index
    %c0_18 = arith.constant 0 : index
    %33 = vector.load %arg6[%c0_17, %c0_18] : memref<1x32xf32, #tpu.memory_space<vmem>>, vector<1x32xf32>
    %34 = vector.broadcast %33 : vector<1x32xf32> to vector<8x32xf32>
    %35 = arith.addf %32, %34 : vector<8x32xf32>
    %c0_19 = arith.constant 0 : index
    %c0_20 = arith.constant 0 : index
    %36 = vector.load %arg10[%c0_19, %c0_20] : memref<8x32xf32, #tpu.memory_space<vmem>>, vector<8x32xf32>
    tpu.vector_store %arg10[%c0_19, %c0_20], %35 {strides = array<i32>} : memref<8x32xf32, #tpu.memory_space<vmem>>, vector<8x32xf32>,
    %c0_21 = arith.constant 0 : index
    %c0_22 = arith.constant 0 : index
    %37 = vector.load %arg7[%c0_21, %c0_22] : memref<32x32xf32, #tpu.memory_space<vmem>>, vector<32x32xf32>
    %cst_23 = arith.constant dense<0.000000e+00> : vector<8x32xf32>
    %38 = tpu.matmul %22, %37, %cst_23 {dimension_numbers = #tpu.dot_dimension_numbers<[1], [0], [0], [1], [0, 0, 1, 1], [], []>} : vector<8x32xf32>, vector<32x32xf32>, vector<8x32xf32> -> vector<8x32xf32>
    %c0_24 = arith.constant 0 : index
    %c0_25 = arith.constant 0 : index
    %39 = vector.load %arg8[%c0_24, %c0_25] : memref<1x32xf32, #tpu.memory_space<vmem>>, vector<1x32xf32>
    %40 = vector.broadcast %39 : vector<1x32xf32> to vector<8x32xf32>
    %41 = arith.addf %38, %40 : vector<8x32xf32>
    %c0_26 = arith.constant 0 : index
    %c0_27 = arith.constant 0 : index
    %42 = vector.load %arg11[%c0_26, %c0_27] : memref<8x32xf32, #tpu.memory_space<vmem>>, vector<8x32xf32>
    tpu.vector_store %arg11[%c0_26, %c0_27], %41 {strides = array<i32>} : memref<8x32xf32, #tpu.memory_space<vmem>>, vector<8x32xf32>,
    return
  }
  func.func @transform_0(%arg0: i32) -> i32 {
    %c0_i32 = arith.constant 0 : i32
    %c0_i32_0 = arith.constant 0 : i32
    return %c0_i32 : i32
  }
  func.func @transform_1(%arg0: i32) -> (i32, i32) {
    %c0_i32 = arith.constant 0 : i32
    %c0_i32_0 = arith.constant 0 : i32
    return %arg0, %c0_i32 : i32, i32
  }
  func.func @transform_2(%arg0: i32) -> (i32, i32) {
    %c0_i32 = arith.constant 0 : i32
    %c0_i32_0 = arith.constant 0 : i32
    %c0_i32_1 = arith.constant 0 : i32
    return %c0_i32, %c0_i32_0 : i32, i32
  }
  func.func @transform_3(%arg0: i32) -> (i32, i32) {
    %c0_i32 = arith.constant 0 : i32
    %c0_i32_0 = arith.constant 0 : i32
    %c0_i32_1 = arith.constant 0 : i32
    return %c0_i32, %c0_i32_0 : i32, i32
  }
  func.func @transform_4(%arg0: i32) -> (i32, i32) {
    %c0_i32 = arith.constant 0 : i32
    %c0_i32_0 = arith.constant 0 : i32
    %c0_i32_1 = arith.constant 0 : i32
    return %c0_i32, %c0_i32_0 : i32, i32
  }
  func.func @transform_5(%arg0: i32) -> (i32, i32) {
    %c0_i32 = arith.constant 0 : i32
    %c0_i32_0 = arith.constant 0 : i32
    %c0_i32_1 = arith.constant 0 : i32
    return %c0_i32, %c0_i32_0 : i32, i32
  }
  func.func @transform_6(%arg0: i32) -> (i32, i32) {
    %c0_i32 = arith.constant 0 : i32
    %c0_i32_0 = arith.constant 0 : i32
    %c0_i32_1 = arith.constant 0 : i32
    return %c0_i32, %c0_i32_0 : i32, i32
  }
  func.func @transform_7(%arg0: i32) -> (i32, i32) {
    %c0_i32 = arith.constant 0 : i32
    %c0_i32_0 = arith.constant 0 : i32
    %c0_i32_1 = arith.constant 0 : i32
    return %c0_i32, %c0_i32_0 : i32, i32
  }
  func.func @transform_8(%arg0: i32) -> (i32, i32) {
    %c0_i32 = arith.constant 0 : i32
    %c0_i32_0 = arith.constant 0 : i32
    return %arg0, %c0_i32 : i32, i32
  }
  func.func @transform_9(%arg0: i32) -> (i32, i32) {
    %c0_i32 = arith.constant 0 : i32
    %c0_i32_0 = arith.constant 0 : i32
    return %arg0, %c0_i32 : i32, i32
  }
  func.func @transform_10(%arg0: i32) -> (i32, i32) {
    %c0_i32 = arith.constant 0 : i32
    %c0_i32_0 = arith.constant 0 : i32
    return %arg0, %c0_i32 : i32, i32
  }
}

</mosaic_0001>

<bundles_post_ra>
// kernel: tpu_custom_call.1
= control target key start
LH: loop header
LB: loop body
LE: loop exit
PB: predicated region body
PF: predicated region fallthrough
CT: control target
= control target key end

     0   :  { %16 = vsyncpa [#allocation5], 0  ;;  %s774_s0 = inlined_call_operand.hbm [shape: f32[2], index: 0, kind: input, shape index: {}]   ;;  %s775_s1 = inlined_call_operand.hbm [shape: f32[8,32], index: 1, kind: input, shape index: {}]   ;;  %s776_s2 = inlined_call_operand.hbm [shape: f32[32,32], index: 2, kind: input, shape index: {}]   ;;  %s777_s3 = inlined_call_operand.vmem [shape: f32[1,32], index: 3, kind: input, shape index: {}]   ;;  %s778_s4 = inlined_call_operand.hbm [shape: f32[32,32], index: 4, kind: input, shape index: {}]   ;;  %s779_s5 = inlined_call_operand.vmem [shape: f32[1,32], index: 5, kind: input, shape index: {}]   ;;  %s780_s6 = inlined_call_operand.hbm [shape: f32[32,32], index: 6, kind: input, shape index: {}]   ;;  %s781_s7 = inlined_call_operand.vmem [shape: f32[1,32], index: 7, kind: input, shape index: {}]   ;;  %s782_s8 = inlined_call_operand.hbm [shape: f32[8,32], index: 8, kind: output, shape index: {0}]   ;;  %s783_s9 = inlined_call_operand.hbm [shape: f32[8,32], index: 9, kind: output, shape index: {1}]   ;;  %s784_s10 = inlined_call_operand.hbm [shape: f32[8,32], index: 10, kind: output, shape index: {2}]  }
   0x1   :  { %17 = vsyncpa [#allocation3], 0 }
   0x2   :  { %18 = vsyncpa [#allocation8], 0 }
   0x3   :  { %19 = vsyncpa [#allocation11], 0 }
   0x4   :  { %20 = vsyncpa [#allocation4], 0 }
   0x5   :  { %21 = vsyncpa [#allocation14], 0  ;;  %s654_s13 = smov [#allocation7]  }
   0x6   :  { %s45_s14 = sshll.u32 %s654_s13, 4  ;;  %s46_s14 = int_to_ptr.vmem [resolvable:$true] %s45_s14 }
   0x7   :  { %s502_s15 = scalar_lea.vmem %s46_s14, 512  ;;  %p507_p1 = scmp.lt.s32.totalorder %s46_s14, %s46_s14 }
   0x8   :  { %p503_p0 = scmp.ne.s32.totalorder %s46_s14, %s502_s15  ;;  %p508_p2 = scmp.lt.s32.totalorder %s502_s15, %s502_s15 }
   0xa   :  { %p509_p3 = por %p508_p2, %p507_p1 }
   0xc   :  { %p510_p4 = pnand %p509_p3, %p503_p0 }
   0xe   :  { %513 = shalt.err (!%p510_p4)
}
   0xf   :  { %s655_s16 = smov 128   ;;  %s656_s17 = smov 8  }
  0x10   :  { %51 = dma.hbm_to_vmem [thread:$0]  %s776_s2, 512, %s46_s14, [#allocation8], %s655_s16, %s655_s16, %s656_s17  }
  0x11   :  { %s657_s20 = smov [#allocation2]   ;;  %s658_s23 = smov [#allocation6]  }
  0x12   :  { %29 = dma.hbm_to_smem %s774_s0, 16, %s657_s20, [#allocation5]  }
  0x13   :  { %s36_s24 = sshll.u32 %s658_s23, 4  ;;  %s659_s25 = smov [#allocation9]   ;;  %s37_s24 = int_to_ptr.vmem [resolvable:$true] %s36_s24 }
  0x14   :  { %s59_s26 = sshll.u32 %s659_s25, 4  ;;  %s530_s27 = scalar_lea.vmem %s37_s24, 128  ;;  %s60_s26 = int_to_ptr.vmem [resolvable:$true] %s59_s26 }
  0x15   :  { %p531_p5 = scmp.ne.s32.totalorder %s37_s24, %s530_s27  ;;  %p535_p6 = scmp.lt.s32.totalorder %s37_s24, %s37_s24 }
  0x16   :  { %p536_p7 = scmp.lt.s32.totalorder %s530_s27, %s530_s27 }
  0x18   :  { %p537_p8 = por %p536_p7, %p535_p6 }
  0x1a   :  { %p538_p9 = pnand %p537_p8, %p531_p5 }
  0x1c   :  { %541 = shalt.err (!%p538_p9)
}
  0x1d   :  { %39 = dma.hbm_to_vmem [thread:$0]  %s775_s1, 128, %s37_s24, [#allocation3]  }
  0x1e   :  { %s550_s29 = scalar_lea.vmem %s60_s26, 512  ;;  %p555_p11 = scmp.lt.s32.totalorder %s60_s26, %s60_s26 }
  0x1f   :  { %p551_p10 = scmp.ne.s32.totalorder %s60_s26, %s550_s29  ;;  %p556_p12 = scmp.lt.s32.totalorder %s550_s29, %s550_s29 }
  0x21   :  { %p557_p13 = por %p556_p12, %p555_p11 }
  0x23   :  { %p558_p0 = pnand %p557_p13, %p551_p10 }
  0x25   :  { %561 = shalt.err (!%p558_p0)
}
  0x26   :  { %65 = dma.hbm_to_vmem [thread:$0]  %s778_s4, 512, %s60_s26, [#allocation8], %s655_s16, %s655_s16, %s656_s17  }
  0x27   :  { %s660_s11 = smov [#allocation10]  }
  0x28   :  { %s73_s12 = sshll.u32 %s660_s11, 4  ;;  %s74_s12 = int_to_ptr.vmem [resolvable:$true] %s73_s12 }
  0x29   :  { %s570_s13 = scalar_lea.vmem %s74_s12, 512  ;;  %p575_p2 = scmp.lt.s32.totalorder %s74_s12, %s74_s12 }
  0x2a   :  { %p571_p1 = scmp.ne.s32.totalorder %s74_s12, %s570_s13  ;;  %p576_p3 = scmp.lt.s32.totalorder %s570_s13, %s570_s13 }
  0x2c   :  { %p577_p4 = por %p576_p3, %p575_p2 }
  0x2e   :  { %p578_p5 = pnand %p577_p4, %p571_p1 }
  0x30   :  { %581 = shalt.err (!%p578_p5)
}
  0x31   :  { %79 = dma.hbm_to_vmem [thread:$0]  %s780_s6, 512, %s74_s12, [#allocation11], %s655_s16, %s655_s16, %s656_s17  }
  0x32   :  { %642 = dma.done.wait [#allocation5], 16  }
  0x33   :  { %643 = vsyncadd [#allocation5], 4294967280 }
  0x34   :  { %644 = dma.done.wait [#allocation3], 128  }
  0x35   :  { %645 = vsyncadd [#allocation3], 4294967168 }
  0x36   :  { %646 = dma.done.wait [#allocation8], 1024  }
  0x37   :  { %647 = vsyncadd [#allocation8], 4294966272 }
  0x38   :  { %648 = dma.done.wait [#allocation11], 512  }
  0x39   :  { %649 = vsyncadd [#allocation11], 4294966784 }
  0x3a   :  { %97 = sfence }
  0x3b   :  { %v100_v0 = vld [vmem:[#allocation6] sm:$0xff]  ;;  %vm101_vm0 = vcmask 261120   ;;  %v661_v9 = vmov 0.0   ;;  %v130_v10 = vld [vmem:[#allocation7 + $0x10] sm:$0xff]  ;;  %v129_v12 = vld [vmem:[#allocation7 + $0x8] sm:$0xff]  ;;  %vm662_vm1 = vmmov 0  }
  0x3c   :  { %v102_v1 = vsel %vm101_vm0, %v100_v0, 0.0  ;;  %v131_v7 = vld [vmem:[#allocation7 + $0x18] sm:$0xff]  ;;  %445 = vmatprep.subr.mxu0 %v661_v9  ;;  %456 = vmatprep.subr.mxu1 %v661_v9  ;;  %v216_v11 = vld [vmem:[#allocation9 + $0x10] sm:$0xff]  ;;  %v215_v13 = vld [vmem:[#allocation9 + $0x8] sm:$0xff]  ;;  %s98_s4 = sld [smem:[#allocation2]]  ;;  %s663_s19 = smov [#allocation13]  }
  0x3d   :  { %103 = vadd.xlane.f32.xlu0 %v102_v1  ;;  %v217_v8 = vld [vmem:[#allocation9 + $0x18] sm:$0xff]  ;;  %446 = vmatpush3.msra.mxu0 %v131_v7  ;;  %v128_v14 = vld [vmem:[#allocation7] sm:$0xff]  ;;  %s423_s6 = sld [smem:[#allocation2 + $0x1]]  ;;  %v298_v31 = vld [vmem:[#allocation10 + $0x10] sm:$0xff]  ;;  %s394_s20 = sshll.u32 %s663_s19, 4  ;;  %s395_s20 = int_to_ptr.vmem [resolvable:$true] %s394_s20 }
  0x3e   :  { %457 = vmatpush3.msra.mxu1 %v217_v8  ;;  %447 = vmatprep.subr.mxu0 %v661_v9  ;;  %v214_v15 = vld [vmem:[#allocation9] sm:$0xff]  ;;  %v299_v30 = vld [vmem:[#allocation10 + $0x18] sm:$0xff]  ;;  %v297_v32 = vld [vmem:[#allocation10 + $0x8] sm:$0xff]  ;;  %s664_s21 = smov [#allocation12]   ;;  %p587_p7 = scmp.lt.s32.totalorder %s395_s20, %s395_s20 }
  0x3f   :  { %458 = vmatprep.subr.mxu1 %v661_v9  ;;  %448 = vmatpush3.msra.mxu0 %v130_v10  ;;  %v296_v33 = vld [vmem:[#allocation10] sm:$0xff]  ;;  %v424_v34 = vld [vmem:[%s777_s3] ss:$0 sm:$0xff]  ;;  %s384_s22 = sshll.u32 %s664_s21, 4  ;;  %s582_s3 = scalar_lea.vmem %s395_s20, 128  ;;  %s385_s22 = int_to_ptr.vmem [resolvable:$true] %s384_s22 }
  0x40   :  { %459 = vmatpush3.msra.mxu1 %v216_v11  ;;  %449 = vmatprep.subr.mxu0 %v661_v9  ;;  %v426_v35 = vld [vmem:[%s779_s5] ss:$0 sm:$0xff]  ;;  %p583_p6 = scmp.ne.s32.totalorder %s395_s20, %s582_s3  ;;  %p588_p8 = scmp.lt.s32.totalorder %s582_s3, %s582_s3 }
  0x41   :  { %460 = vmatprep.subr.mxu1 %v661_v9  ;;  %450 = vmatpush3.msra.mxu0 %v129_v12 }
  0x42   :  { %461 = vmatpush3.msra.mxu1 %v215_v13  ;;  %451 = vmatprep.subr.mxu0 %v661_v9  ;;  %v114_v24 = vstv %s98_s4  ;;  %p589_p9 = por %p588_p8, %p587_p7 }
  0x43   :  { %462 = vmatprep.subr.mxu1 %v661_v9  ;;  %452 = vmatpush3.msra.mxu0 %v128_v14  ;;  %v126_v27 = vstv %s423_s6 }
  0x44   :  { %453 = vmatprep.mubr.msk.f32.mxu0 %vm662_vm1, %v661_v9  ;;  %463 = vmatpush3.msra.mxu1 %v214_v15  ;;  %p590_p10 = pnand %p589_p9, %p583_p6 }
  0x45   :  { %464 = vmatprep.mubr.msk.f32.mxu1 %vm662_vm1, %v661_v9  ;;  %467 = vmatprep.subr.mxu0 %v661_v9 }
  0xc6   :  { %v104_v2 = vpop.xlane.xlu0 %103 }
  0xc7   :  { %v106_v3 = vmul.f32 0.03125, %v104_v2 }
  0xc9   :  { %v107_v4 = vsub.f32 %v100_v0, %v106_v3 }
  0xcb   :  { %v108_v5 = vmul.f32 %v107_v4, %v107_v4  ;;  %v115_v25 = vmul.f32 %v114_v24, %v107_v4 }
  0xcd   :  { %v109_v6 = vsel %vm101_vm0, %v108_v5, 0.0 }
  0xce   :  { %110 = vadd.xlane.f32.xlu0 %v109_v6 }
 0x157   :  { %v111_v16 = vpop.xlane.xlu0 %110 }
 0x158   :  { %v113_v17 = vmul.f32 0.032258064, %v111_v16 }
 0x15a   :  { %490 = vrsqrt.f32 %v113_v17  ;;  %vm118_vm2 = vcmp.eq.f32.partialorder %v113_v17, inf  ;;  %v121_v20 = vand.u32 2147483648, %v113_v17  ;;  %vm120_vm3 = vcmp.eq.f32.partialorder %v113_v17, 0.0 }
 0x167   :  { %v491_v18 = vpop.eup %490 }
 0x168   :  { %v117_v19 = vmul.f32 %v491_v18, %v113_v17 }
 0x16a   :  { %v119_v21 = vsel %vm118_vm2, %v113_v17, %v117_v19 }
 0x16b   :  { %v122_v22 = vsel %vm120_vm3, %v121_v20, %v119_v21 }
 0x16c   :  { %v123_v23 = vadd.f32 1e-06, %v122_v22 }
 0x16e   :  { %492 = vrcp.f32 %v123_v23 }
 0x17b   :  { %v493_v26 = vpop.eup %492 }
 0x17c   :  { %v125_v28 = vmul.f32 %v493_v26, %v115_v25 }
 0x17e   :  { %v127_v29 = vadd.f32 %v126_v27, %v125_v28 }
 0x180   :  { %454 = vmatmul.mubr.msk.f32.vlgmr.msra.gmra.mxu0 %vm101_vm0, %v127_v29  ;;  %465 = vmatmul.mubr.msk.f32.vlgmr.msra.gmra.mxu1 %vm101_vm0, %v127_v29 }
 0x181   :  { %468 = vmatpush3.msra.mxu0 %v299_v30  ;;  %475 = vmatprep.mubr.msk.f32.mxu0 %vm662_vm1, %v661_v9 }
 0x182   :  { %469 = vmatprep.subr.mxu0 %v661_v9 }
 0x183   :  { %470 = vmatpush3.msra.mxu0 %v298_v31 }
 0x184   :  { %471 = vmatprep.subr.mxu0 %v661_v9 }
 0x185   :  { %472 = vmatpush3.msra.mxu0 %v297_v32 }
 0x186   :  { %473 = vmatprep.subr.mxu0 %v661_v9 }
 0x187   :  { %474 = vmatpush3.msra.mxu0 %v296_v33 }
 0x188   :  { %476 = vmatmul.mubr.msk.f32.vlgmr.msra.gmra.mxu0 %vm101_vm0, %v127_v29 }
 0x240   :  { %v208_v36 = vpop.f32.mrf.mxu0  ;;  %v291_v37 = vpop.f32.mrf.mxu1 }
 0x241   :  { %v209_v38 = vadd.f32 %v424_v34, %v208_v36  ;;  %v292_v39 = vadd.f32 %v426_v35, %v291_v37 }
 0x242   :  { %v455_v40 = vpop.f32.mrf.mxu0  ;;  %v466_v41 = vpop.f32.mrf.mxu1 }
 0x243   :  { %v212_v42 = vmul.f32 0.35355338, %v209_v38  ;;  %295 = vst.msk [vmem:[#allocation13] sm:$0xff] %vm101_vm0, %v292_v39 }
 0x244   :  { %593 = shalt.err (!%p590_p10)
}
 0x245   :  { %397 = dma.vmem_to_hbm [thread:$0]  %s395_s20, 128, %s783_s9, [#allocation14]   ;;  %213 = vst.msk [vmem:[#allocation12] sm:$0xff] %vm101_vm0, %v212_v42  ;;  %v428_v43 = vld [vmem:[%s781_s7] ss:$0 sm:$0xff] }
 0x246   :  { %s665_s24 = smov [#allocation15]   ;;  %s602_s28 = scalar_lea.vmem %s385_s22, 128 }
 0x247   :  { %s404_s25 = sshll.u32 %s665_s24, 4  ;;  %p603_p11 = scmp.ne.s32.totalorder %s385_s22, %s602_s28  ;;  %s405_s25 = int_to_ptr.vmem [resolvable:$true] %s404_s25 }
 0x248   :  { %p607_p12 = scmp.lt.s32.totalorder %s385_s22, %s385_s22  ;;  %p608_p13 = scmp.lt.s32.totalorder %s602_s28, %s602_s28 }
 0x24a   :  { %p609_p0 = por %p608_p13, %p607_p12 }
 0x24c   :  { %p610_p1 = pnand %p609_p0, %p603_p11 }
 0x24e   :  { %613 = shalt.err (!%p610_p1)
}
 0x24f   :  { %387 = dma.vmem_to_hbm [thread:$0]  %s385_s22, 128, %s782_s8, [#allocation4]   ;;  %v373_v44 = vpop.f32.mrf.mxu0 }
 0x250   :  { %v374_v45 = vadd.f32 %v428_v43, %v373_v44  ;;  %s622_s9 = scalar_lea.vmem %s405_s25, 128  ;;  %p627_p3 = scmp.lt.s32.totalorder %s405_s25, %s405_s25 }
 0x251   :  { %v477_v46 = vpop.f32.mrf.mxu0  ;;  %p623_p2 = scmp.ne.s32.totalorder %s405_s25, %s622_s9  ;;  %p628_p4 = scmp.lt.s32.totalorder %s622_s9, %s622_s9 }
 0x252   :  { %377 = vst.msk [vmem:[#allocation15] sm:$0xff] %vm101_vm0, %v374_v45 }
 0x253   :  { %p629_p5 = por %p628_p4, %p627_p3 }
 0x255   :  { %p630_p6 = pnand %p629_p5, %p623_p2 }
 0x257   :  { %633 = shalt.err (!%p630_p6)
}
 0x258   :  { %407 = dma.vmem_to_hbm [thread:$0]  %s405_s25, 128, %s784_s10, [#allocation14]  }
 0x259   :  { %650 = dma.done.wait [#allocation4], 128  }
 0x25a   :  { %651 = vsyncadd [#allocation4], 4294967168 }
 0x25b   :  { %652 = dma.done.wait [#allocation14], 256  }
 0x25c   :  { %653 = vsyncadd [#allocation14], 4294967040 }
 0x25d   :  { %417 = vsyncpa [#allocation3], 1 }
 0x25e   :  { %418 = vsyncpa [#allocation8], 1 }
 0x25f   :  { %419 = vsyncpa [#allocation11], 1 }
 0x260   :  { %420 = vsyncpa [#allocation4], 1 }
 0x261   :  { %421 = vsyncpa [#allocation14], 1 }
 0x262   :  { %422 = vsyncpa [#allocation5], 1 }

</bundles_post_ra>
